<compile_context>
chip_gen: v7x
topology: tpu7x:2x2x1
jax: 0.10.0
libtpu: 0.0.40
codegen_flags: <defaults>
</compile_context>

<pallas_src>
import functools

import jax
import jax.numpy as jnp
from jax.experimental import pallas as pl
from jax.experimental.pallas import tpu as pltpu

HIDDEN = 32     # logical hidden_size (small stand-in for 256)
VOCAB = 28      # logical output_size (alphabet + SOS/EOS-ish)
HP = 128        # lane-padded hidden size
VP = 128        # lane-padded vocab size
BATCH = 8       # decode streams per kernel (one full sublane tile)
SEQ = 6         # fused timesteps per kernel launch (teacher-forced tokens)


def _decoder_seq_kernel(tok_ref,                                   # SMEM (T, B) int32 (scalar prefetch)
                        emb_ref, h0_ref, c0_ref,
                        w_cat_ref, b_cat_ref, w_out_ref, b_out_ref,  # VMEM-resident weights
                        logits_ref, h_out_ref, c_out_ref,            # outputs
                        x_sc, h_sc, c_sc):                           # VMEM scratch
    t = pl.program_id(0)
    B, HPv = h_sc.shape

    # Initialize recurrent state in VMEM scratch on the first step.
    @pl.when(t == 0)
    def _():
        h_sc[...] = h0_ref[...]
        c_sc[...] = c0_ref[...]

    # ---- embedding gather (token ids in SMEM select sublane rows) ----
    # TODO(synk): for a realistic vocabulary (v7x: 64 MiB VMEM) gather only the
    # needed rows via scalar-prefetch-driven DMA instead of a full-table VMEM block.
    for b in range(B):                                     # B is small & static
        tok = tok_ref[t, b]
        x_sc[pl.ds(b, 1), :] = emb_ref[pl.ds(tok, 1), :]
    x = jnp.maximum(x_sc[...], 0.0)                        # ReLU, (B, HP)

    # ---- fused LSTM gate matmul: [x | h] @ [[W_ih^T],[W_hh^T]] + (b_ih+b_hh) ----
    xh = jnp.concatenate([x, h_sc[...]], axis=1)           # (B, 2*HP)
    gates = jnp.dot(xh, w_cat_ref[...],
                    preferred_element_type=jnp.float32) + b_cat_ref[...]   # (B, 4*HP)

    # Gate slices land on 128-lane boundaries (free), order i, f, g, o.
    i_g = jax.nn.sigmoid(gates[:, 0 * HPv:1 * HPv])
    f_g = jax.nn.sigmoid(gates[:, 1 * HPv:2 * HPv])
    g_g = jnp.tanh(gates[:, 2 * HPv:3 * HPv])
    o_g = jax.nn.sigmoid(gates[:, 3 * HPv:4 * HPv])

    c_new = f_g * c_sc[...] + i_g * g_g
    h_new = o_g * jnp.tanh(c_new)
    h_sc[...] = h_new
    c_sc[...] = c_new

    # ---- output projection: lane-dense (B, 128) store per step ----
    logits_ref[0] = jnp.dot(h_new, w_out_ref[...],
                            preferred_element_type=jnp.float32) + b_out_ref[...]

    # Write final recurrent state only once.
    @pl.when(t == pl.num_programs(0) - 1)
    def _():
        h_out_ref[...] = h_new
        c_out_ref[...] = c_new


def prepare_params(params):
    """One-time weight prep: transpose, fuse, and zero-pad all lane dims to 128."""
    H = params["emb"].shape[1]
    V = params["w_out"].shape[0]

    emb_pad = jnp.zeros((VP, HP), jnp.float32).at[:V, :H].set(params["emb"])

    w_ih_t = params["w_ih"].T                      # (H, 4H)
    w_hh_t = params["w_hh"].T                      # (H, 4H)
    b = params["b_ih"] + params["b_hh"]            # (4H,)

    w_cat = jnp.zeros((2 * HP, 4 * HP), jnp.float32)
    b_cat = jnp.zeros((1, 4 * HP), jnp.float32)
    for g in range(4):                             # place each gate block at a 128-lane boundary
        w_cat = w_cat.at[:H, g * HP:g * HP + H].set(w_ih_t[:, g * H:(g + 1) * H])
        w_cat = w_cat.at[HP:HP + H, g * HP:g * HP + H].set(w_hh_t[:, g * H:(g + 1) * H])
        b_cat = b_cat.at[0, g * HP:g * HP + H].set(b[g * H:(g + 1) * H])

    w_out_pad = jnp.zeros((HP, VP), jnp.float32).at[:H, :V].set(params["w_out"].T)
    b_out_pad = jnp.zeros((1, VP), jnp.float32).at[0, :V].set(params["b_out"])

    return {"emb": emb_pad, "w_cat": w_cat, "b_cat": b_cat,
            "w_out": w_out_pad, "b_out": b_out_pad}


@jax.jit
def decoder_rnn_forward(prep, tokens, h0, c0):
    """tokens: (T, B) int32 (teacher-forced inputs); h0, c0: (B, HP) f32 (lane-padded).
    Returns (logits (T, B, VP) padded, (h_final, c_final) each (B, HP))."""
    T, B = tokens.shape
    # Bounds-safety: VMEM gathers have no hardware bounds check.
    tokens = jnp.clip(tokens.astype(jnp.int32), 0, VOCAB - 1)

    grid_spec = pltpu.PrefetchScalarGridSpec(
        num_scalar_prefetch=1,
        grid=(T,),
        in_specs=[
            pl.BlockSpec((VP, HP), lambda t, tok: (0, 0)),            # embedding (VMEM-resident)
            pl.BlockSpec((B, HP), lambda t, tok: (0, 0)),             # h0
            pl.BlockSpec((B, HP), lambda t, tok: (0, 0)),             # c0
            pl.BlockSpec((2 * HP, 4 * HP), lambda t, tok: (0, 0)),    # fused gate weights
            pl.BlockSpec((1, 4 * HP), lambda t, tok: (0, 0)),         # fused gate bias
            pl.BlockSpec((HP, VP), lambda t, tok: (0, 0)),            # output weights
            pl.BlockSpec((1, VP), lambda t, tok: (0, 0)),             # output bias
        ],
        out_specs=(
            pl.BlockSpec((1, B, VP), lambda t, tok: (t, 0, 0)),       # per-step logits
            pl.BlockSpec((B, HP), lambda t, tok: (0, 0)),             # final h
            pl.BlockSpec((B, HP), lambda t, tok: (0, 0)),             # final c
        ),
        scratch_shapes=[
            pltpu.VMEM((B, HP), jnp.float32),   # gathered embeddings
            pltpu.VMEM((B, HP), jnp.float32),   # h state (resident across steps)
            pltpu.VMEM((B, HP), jnp.float32),   # c state (resident across steps)
        ],
    )

    flops = T * (2 * B * (2 * HP) * (4 * HP) + 2 * B * HP * VP)
    transcendentals = T * B * 5 * HP
    weight_bytes = 4 * (VP * HP + 2 * HP * 4 * HP + 4 * HP + HP * VP + VP)
    bytes_accessed = weight_bytes + tokens.size * 4 + 4 * (4 * B * HP + T * B * VP)

    logits, h_n, c_n = pl.pallas_call(
        _decoder_seq_kernel,
        grid_spec=grid_spec,
        out_shape=(
            jax.ShapeDtypeStruct((T, B, VP), jnp.float32),
            jax.ShapeDtypeStruct((B, HP), jnp.float32),
            jax.ShapeDtypeStruct((B, HP), jnp.float32),
        ),
        compiler_params=pltpu.CompilerParams(
            dimension_semantics=("arbitrary",),        # recurrent carry -> sequential grid
            vmem_limit_bytes=32 * 1024 * 1024,
        ),
        cost_estimate=pl.CostEstimate(flops=flops,
                                      transcendentals=transcendentals,
                                      bytes_accessed=bytes_accessed),
    )(tokens, prep["emb"], h0, c0, prep["w_cat"], prep["b_cat"],
      prep["w_out"], prep["b_out"])

    return logits, (h_n, c_n)


def init_params(key, hidden_size, output_size):
    k = 1.0 / jnp.sqrt(hidden_size)
    keys = jax.random.split(key, 7)
    u = lambda kk, shape: jax.random.uniform(kk, shape, jnp.float32, -k, k)
    return {
        "emb":   jax.random.normal(keys[0], (output_size, hidden_size), jnp.float32),
        "w_ih":  u(keys[1], (4 * hidden_size, hidden_size)),
        "w_hh":  u(keys[2], (4 * hidden_size, hidden_size)),
        "b_ih":  u(keys[3], (4 * hidden_size,)),
        "b_hh":  u(keys[4], (4 * hidden_size,)),
        "w_out": u(keys[5], (output_size, hidden_size)),
        "b_out": u(keys[6], (output_size,)),
    }


def _reference_seq(params, tokens, h0, c0):
    """Pure-JAX loop of the PyTorch single-step forward (batched over streams)."""
    H = params["emb"].shape[1]
    h, c = h0, c0
    logits_all = []
    for t in range(tokens.shape[0]):
        x = jnp.maximum(params["emb"][tokens[t]], 0.0)                       # (B, H)
        gates = (x @ params["w_ih"].T + params["b_ih"]
                 + h @ params["w_hh"].T + params["b_hh"])                    # (B, 4H)
        i_g = jax.nn.sigmoid(gates[:, 0:H])
        f_g = jax.nn.sigmoid(gates[:, H:2 * H])
        g_g = jnp.tanh(gates[:, 2 * H:3 * H])
        o_g = jax.nn.sigmoid(gates[:, 3 * H:4 * H])
        c = f_g * c + i_g * g_g
        h = o_g * jnp.tanh(c)
        logits_all.append(h @ params["w_out"].T + params["b_out"])
    return jnp.stack(logits_all, axis=0), h, c


if __name__ == "__main__":
    key = jax.random.PRNGKey(0)
    params = init_params(key, HIDDEN, VOCAB)
    prep = prepare_params(params)                     # one-time weight prep (hoisted)

    key, tok_key = jax.random.split(key)
    tokens = jax.random.randint(tok_key, (SEQ, BATCH), 0, VOCAB, dtype=jnp.int32)

    h0 = jnp.zeros((BATCH, HP), jnp.float32)          # initHidden(), lane-padded
    c0 = jnp.zeros((BATCH, HP), jnp.float32)

    logits_pad, (h_n, c_n) = decoder_rnn_forward(prep, tokens, h0, c0)
    jax.block_until_ready((logits_pad, h_n, c_n))

    logits = logits_pad[:, :, :VOCAB]                 # strip lane padding
    h_final = h_n[:, :HIDDEN]
    c_final = c_n[:, :HIDDEN]

    ref_logits, ref_h, ref_c = _reference_seq(
        params, tokens,
        jnp.zeros((BATCH, HIDDEN), jnp.float32),
        jnp.zeros((BATCH, HIDDEN), jnp.float32))

    assert jnp.allclose(logits, ref_logits, atol=1e-4, rtol=1e-5), "logits mismatch"
    assert jnp.allclose(h_final, ref_h, atol=1e-4, rtol=1e-5), "hn mismatch"
    assert jnp.allclose(c_final, ref_c, atol=1e-4, rtol=1e-5), "cn mismatch"

    print("KERNEL_OK")
</pallas_src>

<mosaic_0001>
module attributes {stable_mosaic.version = 11 : i64} {
  func.func @_decoder_seq_kernel(%arg0: i32, %arg1: memref<6x8xi32, #tpu.memory_space<smem>>, %arg2: memref<128x128xf32, #tpu.memory_space<vmem>>, %arg3: memref<8x128xf32, #tpu.memory_space<vmem>>, %arg4: memref<8x128xf32, #tpu.memory_space<vmem>>, %arg5: memref<256x512xf32, #tpu.memory_space<vmem>>, %arg6: memref<1x512xf32, #tpu.memory_space<vmem>>, %arg7: memref<128x128xf32, #tpu.memory_space<vmem>>, %arg8: memref<1x128xf32, #tpu.memory_space<vmem>>, %arg9: memref<1x8x128xf32, #tpu.memory_space<vmem>>, %arg10: memref<8x128xf32, #tpu.memory_space<vmem>>, %arg11: memref<8x128xf32, #tpu.memory_space<vmem>>, %arg12: memref<8x128xf32, #tpu.memory_space<vmem>>, %arg13: memref<8x128xf32, #tpu.memory_space<vmem>>, %arg14: memref<8x128xf32, #tpu.memory_space<vmem>>) attributes {dimension_semantics = [#tpu.dimension_semantics<arbitrary>], iteration_bounds = array<i64: 6>, scalar_prefetch = 1 : i64, scratch_operands = 3 : i64, tpu.core_type = #tpu.core_type<tc>, window_params = [{pipeline_mode = #tpu.pipeline_mode<synchronous>, transform_indices = @transform_0, window_bounds = array<i64: 128, 128>}, {pipeline_mode = #tpu.pipeline_mode<synchronous>, transform_indices = @transform_1, window_bounds = array<i64: 8, 128>}, {pipeline_mode = #tpu.pipeline_mode<synchronous>, transform_indices = @transform_2, window_bounds = array<i64: 8, 128>}, {pipeline_mode = #tpu.pipeline_mode<synchronous>, transform_indices = @transform_3, window_bounds = array<i64: 256, 512>}, {pipeline_mode = #tpu.pipeline_mode<synchronous>, transform_indices = @transform_4, window_bounds = array<i64: 1, 512>}, {pipeline_mode = #tpu.pipeline_mode<synchronous>, transform_indices = @transform_5, window_bounds = array<i64: 128, 128>}, {pipeline_mode = #tpu.pipeline_mode<synchronous>, transform_indices = @transform_6, window_bounds = array<i64: 1, 128>}, {transform_indices = @transform_7, window_bounds = array<i64: 1, 8, 128>}, {pipeline_mode = #tpu.pipeline_mode<synchronous>, transform_indices = @transform_8, window_bounds = array<i64: 8, 128>}, {pipeline_mode = #tpu.pipeline_mode<synchronous>, transform_indices = @transform_9, window_bounds = array<i64: 8, 128>}]} {
    %c0_i32 = arith.constant 0 : i32
    %0 = arith.cmpi eq, %arg0, %c0_i32 : i32
    %1 = arith.extui %0 : i1 to i32
    %c0_i32_0 = arith.constant 0 : i32
    %2 = arith.cmpi ne, %1, %c0_i32_0 : i32
    scf.if %2 {
      %c0_52 = arith.constant 0 : index
      %c0_53 = arith.constant 0 : index
      %92 = vector.load %arg3[%c0_52, %c0_53] : memref<8x128xf32, #tpu.memory_space<vmem>>, vector<8x128xf32>
      %c0_54 = arith.constant 0 : index
      %c0_55 = arith.constant 0 : index
      %93 = vector.load %arg13[%c0_54, %c0_55] : memref<8x128xf32, #tpu.memory_space<vmem>>, vector<8x128xf32>
      tpu.vector_store %arg13[%c0_54, %c0_55], %92 {strides = array<i32>} : memref<8x128xf32, #tpu.memory_space<vmem>>, vector<8x128xf32>,
      %c0_56 = arith.constant 0 : index
      %c0_57 = arith.constant 0 : index
      %94 = vector.load %arg4[%c0_56, %c0_57] : memref<8x128xf32, #tpu.memory_space<vmem>>, vector<8x128xf32>
      %c0_58 = arith.constant 0 : index
      %c0_59 = arith.constant 0 : index
      %95 = vector.load %arg14[%c0_58, %c0_59] : memref<8x128xf32, #tpu.memory_space<vmem>>, vector<8x128xf32>
      tpu.vector_store %arg14[%c0_58, %c0_59], %94 {strides = array<i32>} : memref<8x128xf32, #tpu.memory_space<vmem>>, vector<8x128xf32>,
    } else {
    }
    %3 = arith.index_cast %arg0 : i32 to index
    %c0 = arith.constant 0 : index
    %4 = memref.load %arg1[%3, %c0] : memref<6x8xi32, #tpu.memory_space<smem>>
    %5 = arith.index_cast %4 : i32 to index
    %c0_1 = arith.constant 0 : index
    %6 = vector.load %arg2[%5, %c0_1] : memref<128x128xf32, #tpu.memory_space<vmem>>, vector<1x128xf32>
    %c0_2 = arith.constant 0 : index
    %c0_3 = arith.constant 0 : index
    %7 = vector.load %arg12[%c0_2, %c0_3] : memref<8x128xf32, #tpu.memory_space<vmem>>, vector<1x128xf32>
    tpu.vector_store %arg12[%c0_2, %c0_3], %6 {strides = array<i32>} : memref<8x128xf32, #tpu.memory_space<vmem>>, vector<1x128xf32>,
    %8 = arith.index_cast %arg0 : i32 to index
    %c1 = arith.constant 1 : index
    %9 = memref.load %arg1[%8, %c1] : memref<6x8xi32, #tpu.memory_space<smem>>
    %10 = arith.index_cast %9 : i32 to index
    %c0_4 = arith.constant 0 : index
    %11 = vector.load %arg2[%10, %c0_4] : memref<128x128xf32, #tpu.memory_space<vmem>>, vector<1x128xf32>
    %c1_5 = arith.constant 1 : index
    %c0_6 = arith.constant 0 : index
    %12 = vector.load %arg12[%c1_5, %c0_6] : memref<8x128xf32, #tpu.memory_space<vmem>>, vector<1x128xf32>
    tpu.vector_store %arg12[%c1_5, %c0_6], %11 {strides = array<i32>} : memref<8x128xf32, #tpu.memory_space<vmem>>, vector<1x128xf32>,
    %13 = arith.index_cast %arg0 : i32 to index
    %c2 = arith.constant 2 : index
    %14 = memref.load %arg1[%13, %c2] : memref<6x8xi32, #tpu.memory_space<smem>>
    %15 = arith.index_cast %14 : i32 to index
    %c0_7 = arith.constant 0 : index
    %16 = vector.load %arg2[%15, %c0_7] : memref<128x128xf32, #tpu.memory_space<vmem>>, vector<1x128xf32>
    %c2_8 = arith.constant 2 : index
    %c0_9 = arith.constant 0 : index
    %17 = vector.load %arg12[%c2_8, %c0_9] : memref<8x128xf32, #tpu.memory_space<vmem>>, vector<1x128xf32>
    tpu.vector_store %arg12[%c2_8, %c0_9], %16 {strides = array<i32>} : memref<8x128xf32, #tpu.memory_space<vmem>>, vector<1x128xf32>,
    %18 = arith.index_cast %arg0 : i32 to index
    %c3 = arith.constant 3 : index
    %19 = memref.load %arg1[%18, %c3] : memref<6x8xi32, #tpu.memory_space<smem>>
    %20 = arith.index_cast %19 : i32 to index
    %c0_10 = arith.constant 0 : index
    %21 = vector.load %arg2[%20, %c0_10] : memref<128x128xf32, #tpu.memory_space<vmem>>, vector<1x128xf32>
    %c3_11 = arith.constant 3 : index
    %c0_12 = arith.constant 0 : index
    %22 = vector.load %arg12[%c3_11, %c0_12] : memref<8x128xf32, #tpu.memory_space<vmem>>, vector<1x128xf32>
    tpu.vector_store %arg12[%c3_11, %c0_12], %21 {strides = array<i32>} : memref<8x128xf32, #tpu.memory_space<vmem>>, vector<1x128xf32>,
    %23 = arith.index_cast %arg0 : i32 to index
    %c4 = arith.constant 4 : index
    %24 = memref.load %arg1[%23, %c4] : memref<6x8xi32, #tpu.memory_space<smem>>
    %25 = arith.index_cast %24 : i32 to index
    %c0_13 = arith.constant 0 : index
    %26 = vector.load %arg2[%25, %c0_13] : memref<128x128xf32, #tpu.memory_space<vmem>>, vector<1x128xf32>
    %c4_14 = arith.constant 4 : index
    %c0_15 = arith.constant 0 : index
    %27 = vector.load %arg12[%c4_14, %c0_15] : memref<8x128xf32, #tpu.memory_space<vmem>>, vector<1x128xf32>
    tpu.vector_store %arg12[%c4_14, %c0_15], %26 {strides = array<i32>} : memref<8x128xf32, #tpu.memory_space<vmem>>, vector<1x128xf32>,
    %28 = arith.index_cast %arg0 : i32 to index
    %c5 = arith.constant 5 : index
    %29 = memref.load %arg1[%28, %c5] : memref<6x8xi32, #tpu.memory_space<smem>>
    %30 = arith.index_cast %29 : i32 to index
    %c0_16 = arith.constant 0 : index
    %31 = vector.load %arg2[%30, %c0_16] : memref<128x128xf32, #tpu.memory_space<vmem>>, vector<1x128xf32>
    %c5_17 = arith.constant 5 : index
    %c0_18 = arith.constant 0 : index
    %32 = vector.load %arg12[%c5_17, %c0_18] : memref<8x128xf32, #tpu.memory_space<vmem>>, vector<1x128xf32>
    tpu.vector_store %arg12[%c5_17, %c0_18], %31 {strides = array<i32>} : memref<8x128xf32, #tpu.memory_space<vmem>>, vector<1x128xf32>,
    %33 = arith.index_cast %arg0 : i32 to index
    %c6 = arith.constant 6 : index
    %34 = memref.load %arg1[%33, %c6] : memref<6x8xi32, #tpu.memory_space<smem>>
    %35 = arith.index_cast %34 : i32 to index
    %c0_19 = arith.constant 0 : index
    %36 = vector.load %arg2[%35, %c0_19] : memref<128x128xf32, #tpu.memory_space<vmem>>, vector<1x128xf32>
    %c6_20 = arith.constant 6 : index
    %c0_21 = arith.constant 0 : index
    %37 = vector.load %arg12[%c6_20, %c0_21] : memref<8x128xf32, #tpu.memory_space<vmem>>, vector<1x128xf32>
    tpu.vector_store %arg12[%c6_20, %c0_21], %36 {strides = array<i32>} : memref<8x128xf32, #tpu.memory_space<vmem>>, vector<1x128xf32>,
    %38 = arith.index_cast %arg0 : i32 to index
    %c7 = arith.constant 7 : index
    %39 = memref.load %arg1[%38, %c7] : memref<6x8xi32, #tpu.memory_space<smem>>
    %40 = arith.index_cast %39 : i32 to index
    %c0_22 = arith.constant 0 : index
    %41 = vector.load %arg2[%40, %c0_22] : memref<128x128xf32, #tpu.memory_space<vmem>>, vector<1x128xf32>
    %c7_23 = arith.constant 7 : index
    %c0_24 = arith.constant 0 : index
    %42 = vector.load %arg12[%c7_23, %c0_24] : memref<8x128xf32, #tpu.memory_space<vmem>>, vector<1x128xf32>
    tpu.vector_store %arg12[%c7_23, %c0_24], %41 {strides = array<i32>} : memref<8x128xf32, #tpu.memory_space<vmem>>, vector<1x128xf32>,
    %c0_25 = arith.constant 0 : index
    %c0_26 = arith.constant 0 : index
    %43 = vector.load %arg12[%c0_25, %c0_26] : memref<8x128xf32, #tpu.memory_space<vmem>>, vector<8x128xf32>
    %cst = arith.constant 0.000000e+00 : f32
    %44 = vector.broadcast %cst : f32 to vector<8x128xf32>
    %45 = arith.maximumf %43, %44 : vector<8x128xf32>
    %c0_27 = arith.constant 0 : index
    %c0_28 = arith.constant 0 : index
    %46 = vector.load %arg13[%c0_27, %c0_28] : memref<8x128xf32, #tpu.memory_space<vmem>>, vector<8x128xf32>
    %47 = tpu.concatenate %45, %46 in 1 : vector<8x128xf32>, vector<8x128xf32> -> vector<8x256xf32>
    %c0_29 = arith.constant 0 : index
    %c0_30 = arith.constant 0 : index
    %48 = vector.load %arg5[%c0_29, %c0_30] : memref<256x512xf32, #tpu.memory_space<vmem>>, vector<256x512xf32>
    %cst_31 = arith.constant dense<0.000000e+00> : vector<8x512xf32>
    %49 = tpu.matmul %47, %48, %cst_31 {dimension_numbers = #tpu.dot_dimension_numbers<[1], [0], [0], [1], [0, 0, 1, 1], [], []>} : vector<8x256xf32>, vector<256x512xf32>, vector<8x512xf32> -> vector<8x512xf32>
    %c0_32 = arith.constant 0 : index
    %c0_33 = arith.constant 0 : index
    %50 = vector.load %arg6[%c0_32, %c0_33] : memref<1x512xf32, #tpu.memory_space<vmem>>, vector<1x512xf32>
    %51 = vector.broadcast %50 : vector<1x512xf32> to vector<8x512xf32>
    %52 = arith.addf %49, %51 : vector<8x512xf32>
    %53 = vector.extract_strided_slice %52 {offsets = [0, 0], sizes = [8, 128], strides = [1, 1]} : vector<8x512xf32> to vector<8x128xf32>
    %54 = arith.negf %53 : vector<8x128xf32>
    %55 = math.exp %54 : vector<8x128xf32>
    %cst_34 = arith.constant 1.000000e+00 : f32
    %56 = vector.broadcast %cst_34 : f32 to vector<8x128xf32>
    %57 = arith.addf %56, %55 : vector<8x128xf32>
    %58 = arith.divf %56, %57 : vector<8x128xf32>
    %59 = vector.extract_strided_slice %52 {offsets = [0, 128], sizes = [8, 128], strides = [1, 1]} : vector<8x512xf32> to vector<8x128xf32>
    %60 = arith.negf %59 : vector<8x128xf32>
    %61 = math.exp %60 : vector<8x128xf32>
    %cst_35 = arith.constant 1.000000e+00 : f32
    %62 = vector.broadcast %cst_35 : f32 to vector<8x128xf32>
    %63 = arith.addf %62, %61 : vector<8x128xf32>
    %64 = arith.divf %62, %63 : vector<8x128xf32>
    %65 = vector.extract_strided_slice %52 {offsets = [0, 256], sizes = [8, 128], strides = [1, 1]} : vector<8x512xf32> to vector<8x128xf32>
    %66 = math.tanh %65 : vector<8x128xf32>
    %67 = vector.extract_strided_slice %52 {offsets = [0, 384], sizes = [8, 128], strides = [1, 1]} : vector<8x512xf32> to vector<8x128xf32>
    %68 = arith.negf %67 : vector<8x128xf32>
    %69 = math.exp %68 : vector<8x128xf32>
    %cst_36 = arith.constant 1.000000e+00 : f32
    %70 = vector.broadcast %cst_36 : f32 to vector<8x128xf32>
    %71 = arith.addf %70, %69 : vector<8x128xf32>
    %72 = arith.divf %70, %71 : vector<8x128xf32>
    %c0_37 = arith.constant 0 : index
    %c0_38 = arith.constant 0 : index
    %73 = vector.load %arg14[%c0_37, %c0_38] : memref<8x128xf32, #tpu.memory_space<vmem>>, vector<8x128xf32>
    %74 = arith.mulf %64, %73 : vector<8x128xf32>
    %75 = arith.mulf %58, %66 : vector<8x128xf32>
    %76 = arith.addf %74, %75 : vector<8x128xf32>
    %77 = math.tanh %76 : vector<8x128xf32>
    %78 = arith.mulf %72, %77 : vector<8x128xf32>
    %c0_39 = arith.constant 0 : index
    %c0_40 = arith.constant 0 : index
    %79 = vector.load %arg13[%c0_39, %c0_40] : memref<8x128xf32, #tpu.memory_space<vmem>>, vector<8x128xf32>
    tpu.vector_store %arg13[%c0_39, %c0_40], %78 {strides = array<i32>} : memref<8x128xf32, #tpu.memory_space<vmem>>, vector<8x128xf32>,
    %c0_41 = arith.constant 0 : index
    %c0_42 = arith.constant 0 : index
    %80 = vector.load %arg14[%c0_41, %c0_42] : memref<8x128xf32, #tpu.memory_space<vmem>>, vector<8x128xf32>
    tpu.vector_store %arg14[%c0_41, %c0_42], %76 {strides = array<i32>} : memref<8x128xf32, #tpu.memory_space<vmem>>, vector<8x128xf32>,
    %c0_43 = arith.constant 0 : index
    %c0_44 = arith.constant 0 : index
    %81 = vector.load %arg7[%c0_43, %c0_44] : memref<128x128xf32, #tpu.memory_space<vmem>>, vector<128x128xf32>
    %cst_45 = arith.constant dense<0.000000e+00> : vector<8x128xf32>
    %82 = tpu.matmul %78, %81, %cst_45 {dimension_numbers = #tpu.dot_dimension_numbers<[1], [0], [0], [1], [0, 0, 1, 1], [], []>} : vector<8x128xf32>, vector<128x128xf32>, vector<8x128xf32> -> vector<8x128xf32>
    %c0_46 = arith.constant 0 : index
    %c0_47 = arith.constant 0 : index
    %83 = vector.load %arg8[%c0_46, %c0_47] : memref<1x128xf32, #tpu.memory_space<vmem>>, vector<1x128xf32>
    %84 = vector.broadcast %83 : vector<1x128xf32> to vector<8x128xf32>
    %85 = arith.addf %82, %84 : vector<8x128xf32>
    %c0_48 = arith.constant 0 : index
    %c0_49 = arith.constant 0 : index
    %c0_50 = arith.constant 0 : index
    %86 = vector.load %arg9[%c0_48, %c0_49, %c0_50] : memref<1x8x128xf32, #tpu.memory_space<vmem>>, vector<1x8x128xf32>
    %87 = vector.shape_cast %86 : vector<1x8x128xf32> to vector<8x128xf32>
    %88 = vector.shape_cast %85 : vector<8x128xf32> to vector<1x8x128xf32>
    tpu.vector_store %arg9[%c0_48, %c0_49, %c0_50], %88 {strides = array<i32>} : memref<1x8x128xf32, #tpu.memory_space<vmem>>, vector<1x8x128xf32>,
    %c5_i32 = arith.constant 5 : i32
    %89 = arith.cmpi eq, %arg0, %c5_i32 : i32
    %90 = arith.extui %89 : i1 to i32
    %c0_i32_51 = arith.constant 0 : i32
    %91 = arith.cmpi ne, %90, %c0_i32_51 : i32
    scf.if %91 {
      %c0_52 = arith.constant 0 : index
      %c0_53 = arith.constant 0 : index
      %92 = vector.load %arg10[%c0_52, %c0_53] : memref<8x128xf32, #tpu.memory_space<vmem>>, vector<8x128xf32>
      tpu.vector_store %arg10[%c0_52, %c0_53], %78 {strides = array<i32>} : memref<8x128xf32, #tpu.memory_space<vmem>>, vector<8x128xf32>,
      %c0_54 = arith.constant 0 : index
      %c0_55 = arith.constant 0 : index
      %93 = vector.load %arg11[%c0_54, %c0_55] : memref<8x128xf32, #tpu.memory_space<vmem>>, vector<8x128xf32>
      tpu.vector_store %arg11[%c0_54, %c0_55], %76 {strides = array<i32>} : memref<8x128xf32, #tpu.memory_space<vmem>>, vector<8x128xf32>,
    } else {
    }
    return
  }
  func.func @transform_0(%arg0: i32, %arg1: memref<6x8xi32, #tpu.memory_space<smem>>) -> (i32, i32) {
    %c0_i32 = arith.constant 0 : i32
    %c0_i32_0 = arith.constant 0 : i32
    %c0_i32_1 = arith.constant 0 : i32
    return %c0_i32, %c0_i32_0 : i32, i32
  }
  func.func @transform_1(%arg0: i32, %arg1: memref<6x8xi32, #tpu.memory_space<smem>>) -> (i32, i32) {
    %c0_i32 = arith.constant 0 : i32
    %c0_i32_0 = arith.constant 0 : i32
    %c0_i32_1 = arith.constant 0 : i32
    return %c0_i32, %c0_i32_0 : i32, i32
  }
  func.func @transform_2(%arg0: i32, %arg1: memref<6x8xi32, #tpu.memory_space<smem>>) -> (i32, i32) {
    %c0_i32 = arith.constant 0 : i32
    %c0_i32_0 = arith.constant 0 : i32
    %c0_i32_1 = arith.constant 0 : i32
    return %c0_i32, %c0_i32_0 : i32, i32
  }
  func.func @transform_3(%arg0: i32, %arg1: memref<6x8xi32, #tpu.memory_space<smem>>) -> (i32, i32) {
    %c0_i32 = arith.constant 0 : i32
    %c0_i32_0 = arith.constant 0 : i32
    %c0_i32_1 = arith.constant 0 : i32
    return %c0_i32, %c0_i32_0 : i32, i32
  }
  func.func @transform_4(%arg0: i32, %arg1: memref<6x8xi32, #tpu.memory_space<smem>>) -> (i32, i32) {
    %c0_i32 = arith.constant 0 : i32
    %c0_i32_0 = arith.constant 0 : i32
    %c0_i32_1 = arith.constant 0 : i32
    return %c0_i32, %c0_i32_0 : i32, i32
  }
  func.func @transform_5(%arg0: i32, %arg1: memref<6x8xi32, #tpu.memory_space<smem>>) -> (i32, i32) {
    %c0_i32 = arith.constant 0 : i32
    %c0_i32_0 = arith.constant 0 : i32
    %c0_i32_1 = arith.constant 0 : i32
    return %c0_i32, %c0_i32_0 : i32, i32
  }
  func.func @transform_6(%arg0: i32, %arg1: memref<6x8xi32, #tpu.memory_space<smem>>) -> (i32, i32) {
    %c0_i32 = arith.constant 0 : i32
    %c0_i32_0 = arith.constant 0 : i32
    %c0_i32_1 = arith.constant 0 : i32
    return %c0_i32, %c0_i32_0 : i32, i32
  }
  func.func @transform_7(%arg0: i32, %arg1: memref<6x8xi32, #tpu.memory_space<smem>>) -> (i32, i32, i32) {
    %c0_i32 = arith.constant 0 : i32
    %c0_i32_0 = arith.constant 0 : i32
    %c0_i32_1 = arith.constant 0 : i32
    return %arg0, %c0_i32, %c0_i32_0 : i32, i32, i32
  }
  func.func @transform_8(%arg0: i32, %arg1: memref<6x8xi32, #tpu.memory_space<smem>>) -> (i32, i32) {
    %c0_i32 = arith.constant 0 : i32
    %c0_i32_0 = arith.constant 0 : i32
    %c0_i32_1 = arith.constant 0 : i32
    return %c0_i32, %c0_i32_0 : i32, i32
  }
  func.func @transform_9(%arg0: i32, %arg1: memref<6x8xi32, #tpu.memory_space<smem>>) -> (i32, i32) {
    %c0_i32 = arith.constant 0 : i32
    %c0_i32_0 = arith.constant 0 : i32
    %c0_i32_1 = arith.constant 0 : i32
    return %c0_i32, %c0_i32_0 : i32, i32
  }
}

</mosaic_0001>

<bundles_post_ra>
// kernel: decoder_rnn_forward.1
= control target key start
LH: loop header
LB: loop body
LE: loop exit
PB: predicated region body
PF: predicated region fallthrough
CT: control target
= control target key end

     0   :  { %s1989_s0 = inlined_call_operand.vmem [shape: s32[6,8], index: 0, kind: input, shape index: {}]   ;;  %s1990_s1 = inlined_call_operand.hbm [shape: f32[128,128], index: 1, kind: input, shape index: {}]   ;;  %s1991_s2 = inlined_call_operand.vmem [shape: f32[8,128], index: 2, kind: input, shape index: {}]   ;;  %s1992_s3 = inlined_call_operand.vmem [shape: f32[8,128], index: 3, kind: input, shape index: {}]   ;;  %s1993_s4 = inlined_call_operand.hbm [shape: f32[256,512], index: 4, kind: input, shape index: {}]   ;;  %s1994_s5 = inlined_call_operand.hbm [shape: f32[1,512], index: 5, kind: input, shape index: {}]   ;;  %s1995_s6 = inlined_call_operand.hbm [shape: f32[128,128], index: 6, kind: input, shape index: {}]   ;;  %s1996_s7 = inlined_call_operand.vmem [shape: f32[1,128], index: 7, kind: input, shape index: {}]   ;;  %s1997_s8 = inlined_call_operand.hbm [shape: f32[6,8,128], index: 8, kind: output, shape index: {0}]   ;;  %s1998_s9 = inlined_call_operand.hbm [shape: f32[8,128], index: 9, kind: output, shape index: {1}]   ;;  %s1999_s10 = inlined_call_operand.hbm [shape: f32[8,128], index: 10, kind: output, shape index: {2}]  }
   0x1   :  { %2009 = sst [smem:[#allocation29_spill]] %s1993_s4  ;;  %s16_s15 = sshll.u32 %s1989_s0, 4  ;;  %s17_s15 = int_to_ptr.vmem [resolvable:$true] %s16_s15 }
   0x2   :  { %s1343_s16 = scalar_lea.vmem %s17_s15, 128  ;;  %p1348_p1 = scmp.lt.s32.totalorder %s17_s15, %s17_s15 }
   0x3   :  { %p1344_p0 = scmp.ne.s32.totalorder %s17_s15, %s1343_s16  ;;  %p1349_p2 = scmp.lt.s32.totalorder %s1343_s16, %s1343_s16 }
   0x5   :  { %p1350_p3 = por %p1349_p2, %p1348_p1 }
   0x7   :  { %p1351_p4 = pnand %p1350_p3, %p1344_p0 }
   0x9   :  { %1354 = shalt.err (!%p1351_p4)  }
   0xa   :  { %s1601_s17 = smov [#allocation6]  }
   0xb   :  { %19 = dma.vmem_to_smem %s17_s15, 128, %s1601_s17, [#allocation5] }
   0xc   :  { %1563 = dma.done.wait [#allocation5], 128 }
   0xd   :  { %1564 = vsyncadd [#allocation5], 4294967168 }
   0xe   :  { %21 = sfence }
   0xf   :  { %22 = vsyncpa [#allocation8], 0 }
  0x10   :  { %23 = vsyncpa [#allocation11], 0 }
  0x11   :  { %24 = vsyncpa [#allocation14], 0 }
  0x12   :  { %25 = vsyncpa [#allocation9], 0 }
  0x13   :  { %27 = vsyncpa [#allocation9 + $0x1], 0 }
  0x14   :  { %28 = vsyncpa [#allocation17], 0  ;;  %s1674_s0 = smov 0   ;;  %s1676_s18 = smov 0  }
  0x15   :  { %s1678_s19 = smov 0   ;;  %s1680_s20 = smov 0  }
  0x16 LB: > { %2010 = sst [smem:[#allocation25_spill]] %s1595_s19  ;;  %s1695_s21 = sadd.s32 4294967295, %s1599_s20   ;;  %s1599_s20 = sphi %s1680_s20, %s2040_s20   ;;  %s1595_s19 = sphi %s1678_s19, %s2042_s19   ;;  %s1591_s18 = sphi %s1676_s18, %s2044_s18   ;;  %s1587_s0 = sphi %s1674_s0, %s2043_s0  }
  0x17   : > { %s994_s22 = sadd.s32 4294967294, %s1599_s20   ;;  %s1699_s23 = sadd.s32 1, %s1599_s20  }
  0x18   : > { %2011 = sst [smem:[#allocation26_spill]] %s1699_s23  ;;  %s188_s24 = sadd.s32 1, %s1595_s19 }
  0x19   : > { %s185_s25 = ssub.s32 %s1599_s20, %s1699_s23  ;;  %p198_p5 = scmp.ne.s32.totalorder %s1595_s19, %s1591_s18 }
  0x1a   : > { %p186_p6 = scmp.eq.s32.totalorder %s185_s25, 0  ;;  %p2000_p7 = scmp.eq.s32.totalorder %s1695_s21, 5 }
  0x1b   : > { %p204_p8 = scmp.ne.s32.totalorder %s1591_s18, %s1587_s0  ;;  %p205_p9 = scmp.eq.s32.totalorder %s994_s22, 5 }
  0x1c   : > { %s1710_s26 = scalar_select %p186_p6, %s1595_s19, %s188_s24  }
  0x1d   : > { %p1714_p10 = por %p2000_p7, %p198_p5  ;;  %p1718_p11 = por %p205_p9, %p204_p8 }
  0x1e   : > { %2012 = sst [smem:[#allocation27_spill]] %s1710_s26  ;;  %p995_p12 = scmp.ge.s32.totalorder %s1599_s20, 1 }
  0x1f   : > { %s2013_s27 = scalar_select %p1714_p10, 1, 0 }
  0x20   : > { %s2014_s28 = scalar_select %p1718_p11, 1, 0 }
  0x21   : > { %p254_p13 = scmp.lt.s32.totalorder %s1599_s20, 7  ;;  %p2001_p1 = scmp.eq.s32.totalorder %s1695_s21, 0 }
  0x22   : > { %2015 = sst [smem:[#allocation28_spill]] %s2014_s28  ;;  %s1602_s30 = smov [#allocation10]  }
  0x23   : > { %p1726_p2 = pnand %p995_p12, %p254_p13  ;;  %s285_s11 = sshll.u32 %s1602_s30, 4  ;;  %s286_s11 = int_to_ptr.vmem [resolvable:$true] %s285_s11 }
  0x24   : > { %s1603_s13 = smov [#allocation7]   ;;  %s2018_s4 = sld [smem:[#allocation29_spill]] }
  0x25   : > { %s2016_s29 = scalar_select %p1726_p2, 1, 0 }
  0x26   : > { %p1251_p3 = pneg %p1726_p2  ;;  %s266_s14 = sshll.u32 %s1603_s13, 4  ;;  %s1738_s14 = int_to_ptr.vmem [resolvable:$true] %s266_s14 }
  0x28   : > { %p1734_p4 = pnand %p2001_p1, %p1251_p3 }
  0x2a   : > { %s1355_s17 = scalar_lea.hbm %s2018_s4, 16384  ;;  %p1748_p6 = pneg %p1734_p4 }
  0x2b   : > { %p1356_p5 = scmp.ne.s32.totalorder %s2018_s4, %s1355_s17  ;;  %p1362_p12 = scmp.lt.u32.totalorder %s1355_s17, %s2018_s4 }
  0x2d   : > { %p1358_p8 = pnand %p1748_p6, %p1356_p5 }
  0x2f   : > { %p1359_p9 = pneg %p1358_p8 }
  0x31   : > { %p1364_p13 = pnand %p1362_p12, %p1359_p9 }
  0x33   : > { %1367 = shalt.err (!%p1364_p13)
}
  0x34   : > { %s1368_s15 = scalar_lea.vmem %s286_s11, 16384  ;;  %p1376_p1 = scmp.lt.s32.totalorder %s286_s11, %s286_s11 }
  0x35   : > { %p1369_p3 = scmp.ne.s32.totalorder %s286_s11, %s1368_s15  ;;  %p1377_p11 = scmp.lt.s32.totalorder %s1368_s15, %s1368_s15 }
  0x37   : > { %p1371_p7 = pnand %p1369_p3, %p1748_p6  ;;  %p1378_p10 = por %p1377_p11, %p1376_p1 }
  0x39   : > { %p1372_p0 = pneg %p1371_p7 }
  0x3b   : > { %p1379_p2 = pnand %p1378_p10, %p1372_p0 }
  0x3d   : > { %1382 = shalt.err (!%p1379_p2)
}
  0x3e   : > { %s1604_s16 = smov 512   ;;  %s1605_s22 = smov 32  }
  0x3f   : > { %1257 = dma.hbm_to_vmem [thread:$0]  (!%p1734_p4), %s2018_s4, 16384, %s286_s11, [#allocation11], %s1604_s16, %s1604_s16, %s1605_s22  }
  0x40   : > { %s1383_s26 = scalar_lea.hbm %s1990_s1, 2048 }
  0x41   : > { %p1384_p7 = scmp.ne.s32.totalorder %s1990_s1, %s1383_s26  ;;  %p1390_p0 = scmp.lt.u32.totalorder %s1383_s26, %s1990_s1 }
  0x43   : > { %p1386_p10 = pnand %p1384_p7, %p1748_p6 }
  0x45   : > { %p1387_p11 = pneg %p1386_p10 }
  0x47   : > { %p1392_p1 = pnand %p1390_p0, %p1387_p11 }
  0x49   : > { %1395 = shalt.err (!%p1392_p1)
}
  0x4a   : > { %s1396_s11 = scalar_lea.vmem %s1738_s14, 2048  ;;  %p1404_p9 = scmp.lt.s32.totalorder %s1738_s14, %s1738_s14 }
  0x4b   : > { %p1397_p2 = scmp.ne.s32.totalorder %s1738_s14, %s1396_s11  ;;  %p1405_p12 = scmp.lt.s32.totalorder %s1396_s11, %s1396_s11 }
  0x4d   : > { %p1399_p5 = pnand %p1397_p2, %p1748_p6  ;;  %p1406_p13 = por %p1405_p12, %p1404_p9 }
  0x4f   : > { %p1400_p8 = pneg %p1399_p5 }
  0x51   : > { %p1407_p3 = pnand %p1406_p13, %p1400_p8 }
  0x53   : > { %1410 = shalt.err (!%p1407_p3)
}
  0x54   : > { %s1606_s19 = smov 128   ;;  %s1607_s23 = smov 8  }
  0x55   : > { %1254 = dma.hbm_to_vmem [thread:$0]  (!%p1734_p4), %s1990_s1, 2048, %s1738_s14, [#allocation8], %s1606_s19, %s1606_s19, %s1607_s23  }
  0x56   : > { %s1608_s16 = smov [#allocation12]   ;;  %s1609_s24 = smov [#allocation13]  }
  0x57   : > { %s299_s22 = sshll.u32 %s1608_s16, 4  ;;  %s309_s17 = sshll.u32 %s1609_s24, 4  ;;  %s300_s22 = int_to_ptr.vmem [resolvable:$true] %s299_s22  ;;  %s1790_s17 = int_to_ptr.vmem [resolvable:$true] %s309_s17 }
  0x58   : > { %s1411_s15 = scalar_lea.hbm %s1994_s5, 64 }
  0x59   : > { %p1412_p7 = scmp.ne.s32.totalorder %s1994_s5, %s1411_s15  ;;  %p1418_p0 = scmp.lt.u32.totalorder %s1411_s15, %s1994_s5 }
  0x5b   : > { %p1414_p10 = pnand %p1412_p7, %p1748_p6 }
  0x5d   : > { %p1415_p11 = pneg %p1414_p10 }
  0x5f   : > { %p1420_p1 = pnand %p1418_p0, %p1415_p11 }
  0x61   : > { %1423 = shalt.err (!%p1420_p1)
}
  0x62   : > { %s1424_s28 = scalar_lea.vmem %s300_s22, 64  ;;  %p1432_p9 = scmp.lt.s32.totalorder %s300_s22, %s300_s22 }
  0x63   : > { %p1425_p2 = scmp.ne.s32.totalorder %s300_s22, %s1424_s28  ;;  %p1433_p12 = scmp.lt.s32.totalorder %s1424_s28, %s1424_s28 }
  0x65   : > { %p1427_p5 = pnand %p1425_p2, %p1748_p6  ;;  %p1434_p13 = por %p1433_p12, %p1432_p9 }
  0x67   : > { %p1428_p8 = pneg %p1427_p5 }
  0x69   : > { %p1435_p3 = pnand %p1434_p13, %p1428_p8 }
  0x6b   : > { %1438 = shalt.err (!%p1435_p3)
}
  0x6c   : > { %1260 = dma.hbm_to_vmem [thread:$0]  (!%p1734_p4), %s1994_s5, 64, %s300_s22, [#allocation11]  }
  0x6d   : > { %s1439_s13 = scalar_lea.hbm %s1995_s6, 2048 }
  0x6e   : > { %p1440_p7 = scmp.ne.s32.totalorder %s1995_s6, %s1439_s13  ;;  %p1446_p0 = scmp.lt.u32.totalorder %s1439_s13, %s1995_s6 }
  0x70   : > { %p1442_p10 = pnand %p1440_p7, %p1748_p6 }
  0x72   : > { %p1443_p11 = pneg %p1442_p10 }
  0x74   : > { %p1448_p1 = pnand %p1446_p0, %p1443_p11 }
  0x76   : > { %1451 = shalt.err (!%p1448_p1)
}
  0x77   : > { %s1452_s22 = scalar_lea.vmem %s1790_s17, 2048  ;;  %p1460_p9 = scmp.lt.s32.totalorder %s1790_s17, %s1790_s17 }
  0x78   : > { %p1453_p2 = scmp.ne.s32.totalorder %s1790_s17, %s1452_s22  ;;  %p1461_p12 = scmp.lt.s32.totalorder %s1452_s22, %s1452_s22 }
  0x7a   : > { %p1455_p5 = pnand %p1453_p2, %p1748_p6  ;;  %p1462_p13 = por %p1461_p12, %p1460_p9 }
  0x7c   : > { %p1456_p8 = pneg %p1455_p5 }
  0x7e   : > { %p1463_p3 = pnand %p1462_p13, %p1456_p8 }
  0x80   : > { %1466 = shalt.err (!%p1463_p3)
}
  0x81   : > { %1263 = dma.hbm_to_vmem [thread:$0]  (!%p1734_p4), %s1995_s6, 2048, %s1790_s17, [#allocation14], %s1606_s19, %s1606_s19, %s1607_s23  }
  0x82   : > { %p2020_p7 = scmp.ne.s32.totalorder %s2016_s29, 0 }
  0x83   : > { %p2021_p6 = scmp.eq.s32.totalorder (!%p2020_p7), %s1695_s21, 0 }
  0x84   : > { %328 = sbr.rel (%p2020_p7) target bundleno = 773 (0x305), region = 48 }
  0x8b   : > { %1566 = dma.done.wait (%p2021_p6), [#allocation8], 2048   ;;  %p2022_p10 = pmov %p2021_p6 }
  0x8c   : > { %p2023_p11 = pmov %p2021_p6 }
  0x8d   : > { %1568 = vsyncadd (%p2022_p10), [#allocation8], 4294965248 }
  0x8e   : > { %1570 = dma.done.wait (%p2023_p11), [#allocation11], 16448   ;;  %p2024_p0 = pmov %p2021_p6 }
  0x90   : > { %1572 = vsyncadd (%p2024_p0), [#allocation11], 4294950848  ;;  %p2025_p1 = pmov %p2024_p0 }
  0x91   : > { %p2026_p4 = pmov %p2024_p0 }
  0x92   : > { %1574 = dma.done.wait (%p2025_p1), [#allocation14], 2048  }
  0x93   : > { %1576 = vsyncadd (%p2026_p4), [#allocation14], 4294965248  ;;  %s2008_s29 = sand.u32 1, %s1591_s18   ;;  %p2027_p2 = scmp.ne.s32.totalorder %s1695_s21, 0 }
  0x94   : > { %s1853_s12 = sshll.u32 %s2008_s29, 3  ;;  %v375_v0 = vld [vmem:[%s1991_s2] sm:$0xff] (!%p2027_p2) }
  0x95   : > { %s366_s25 = scalar_lea.vmem [#allocation15], %s1853_s12  ;;  %374 = sbr.rel (%p2027_p2) target bundleno = 156 (0x9c), region = 68  ;;  %v377_v1 = vld [vmem:[%s1992_s3] sm:$0xff] (!%p2027_p2)  ;;  %376 = vst [vmem:[#allocation3] sm:$0xff] (!%p2027_p2), %v375_v0 }
  0x96   : > { %378 = vst [vmem:[#allocation4] sm:$0xff] (!%p2027_p2), %v377_v1 }
  0x9c PF: > { %v423_v2 = vld [vmem:[#allocation10 + $0x8] sm:$0xff]  ;;  %v422_v4 = vld [vmem:[#allocation10] sm:$0xff]  ;;  %v425_v20 = vld [vmem:[#allocation10 + $0x18] sm:$0xff]  ;;  %s1865_s24 = sshll.u32 %s1695_s21, 7  ;;  %vm1611_vm0 = vmmov 0   ;;  %p1012_p5 = scmp.ne.s32.totalorder %s1695_s21, 5 }
  0x9d   : > { %v427_v3 = vld [vmem:[#allocation10 + $0x28] sm:$0xff]  ;;  %v426_v6 = vld [vmem:[#allocation10 + $0x20] sm:$0xff]  ;;  %v429_v21 = vld [vmem:[#allocation10 + $0x38] sm:$0xff]  ;;  %s384_s30 = sadd.s32 1, %s1865_s24  ;;  %s1869_s13 = sld [smem:[#allocation6 + %s1865_s24]] }
  0x9e   : > { %v1073_v5 = vpack.c.bf16 %v427_v3, %v423_v2  ;;  %v431_v7 = vld [vmem:[#allocation10 + $0x48] sm:$0xff]  ;;  %v1075_v9 = vpack.c.bf16 %v426_v6, %v422_v4  ;;  %v430_v11 = vld [vmem:[#allocation10 + $0x40] sm:$0xff]  ;;  %v1137_v23 = vpack.c.bf16 %v429_v21, %v425_v20  ;;  %v424_v24 = vld [vmem:[#allocation10 + $0x10] sm:$0xff]  ;;  %s1871_s15 = sld [smem:[#allocation6 + %s384_s30]]  ;;  %s389_s11 = sadd.s32 2, %s1865_s24 }
  0x9f   : > { %v435_v8 = vld [vmem:[#allocation10 + $0x68] sm:$0xff]  ;;  %v434_v12 = vld [vmem:[#allocation10 + $0x60] sm:$0xff]  ;;  %v428_v25 = vld [vmem:[#allocation10 + $0x30] sm:$0xff]  ;;  %s394_s26 = sadd.s32 3, %s1865_s24  ;;  %s399_s14 = sadd.s32 4, %s1865_s24 }
  0xa0   : > { %v1077_v10 = vpack.c.bf16 %v435_v8, %v431_v7  ;;  %v439_v13 = vld [vmem:[#allocation10 + $0x88] sm:$0xff]  ;;  %1074 = vmatprep.subr.bf16.mxu0 %v1073_v5  ;;  %v1079_v15 = vpack.c.bf16 %v434_v12, %v430_v11  ;;  %v438_v16 = vld [vmem:[#allocation10 + $0x80] sm:$0xff]  ;;  %v1139_v26 = vpack.c.bf16 %v428_v25, %v424_v24  ;;  %1138 = vmatprep.subr.bf16.mxu1 %v1137_v23  ;;  %v433_v28 = vld [vmem:[#allocation10 + $0x58] sm:$0xff]  ;;  %s404_s22 = sadd.s32 5, %s1865_s24  ;;  %s409_s28 = sadd.s32 6, %s1865_s24 }
  0xa1   : > { %v443_v14 = vld [vmem:[#allocation10 + $0xa8] sm:$0xff]  ;;  %1076 = vmatpush1.bf16.msra.mxu0 %v1075_v9  ;;  %v442_v17 = vld [vmem:[#allocation10 + $0xa0] sm:$0xff]  ;;  %v437_v29 = vld [vmem:[#allocation10 + $0x78] sm:$0xff]  ;;  %s414_s4 = sadd.s32 7, %s1865_s24  ;;  %s1879_s19 = sld [smem:[#allocation6 + %s389_s11]] }
  0xa2   : > { %1078 = vmatprep.subr.bf16.mxu0 %v1077_v10  ;;  %v1081_v18 = vpack.c.bf16 %v443_v14, %v439_v13  ;;  %v447_v19 = vld [vmem:[#allocation10 + $0xc8] sm:$0xff]  ;;  %v1083_v27 = vpack.c.bf16 %v442_v17, %v438_v16  ;;  %v432_v30 = vld [vmem:[#allocation10 + $0x50] sm:$0xff]  ;;  %v446_v32 = vld [vmem:[#allocation10 + $0xc0] sm:$0xff]  ;;  %1140 = vmatpush1.bf16.msra.mxu1 %v1139_v26  ;;  %v1141_v34 = vpack.c.bf16 %v437_v29, %v433_v28  ;;  %s1881_s23 = sld [smem:[#allocation6 + %s394_s26]] }
  0xa3   : > { %v451_v22 = vld [vmem:[#allocation10 + $0xe8] sm:$0xff]  ;;  %v450_v33 = vld [vmem:[#allocation10 + $0xe0] sm:$0xff]  ;;  %v436_v35 = vld [vmem:[#allocation10 + $0x70] sm:$0xff]  ;;  %s1883_s17 = sld [smem:[#allocation6 + %s399_s14]]  ;;  %s381_s26 = scalar_lea.vmem [#allocation7], %s1869_s13 }
  0xa4   : > { %v1085_v31 = vpack.c.bf16 %v451_v22, %v447_v19  ;;  %v455_v36 = vld [vmem:[#allocation10 + $0x108] sm:$0xff]  ;;  %v1143_v38 = vpack.c.bf16 %v436_v35, %v432_v30  ;;  %v441_v39 = vld [vmem:[#allocation10 + $0x98] sm:$0xff]  ;;  %1142 = vmatprep.subr.bf16.mxu1 %v1141_v34  ;;  %v440_v41 = vld [vmem:[#allocation10 + $0x90] sm:$0xff]  ;;  %v1087_v43 = vpack.c.bf16 %v450_v33, %v446_v32  ;;  %s1885_s16 = sld [smem:[#allocation6 + %s404_s22]]  ;;  %s386_s14 = scalar_lea.vmem [#allocation7], %s1871_s15 }
  0xa5   : > { %1080 = vmatpush1.bf16.msra.mxu0 %v1079_v15  ;;  %v459_v37 = vld [vmem:[#allocation10 + $0x128] sm:$0xff]  ;;  %v445_v40 = vld [vmem:[#allocation10 + $0xb8] sm:$0xff]  ;;  %v444_v42 = vld [vmem:[#allocation10 + $0xb0] sm:$0xff]  ;;  %s1887_s30 = sld [smem:[#allocation6 + %s409_s28]] }
  0xa6   : > { %1082 = vmatprep.subr.bf16.mxu0 %v1081_v18  ;;  %v454_v44 = vld [vmem:[#allocation10 + $0x100] sm:$0xff]  ;;  %v1145_v46 = vpack.c.bf16 %v445_v40, %v441_v39  ;;  %v1089_v47 = vpack.c.bf16 %v459_v37, %v455_v36  ;;  %1144 = vmatpush1.bf16.msra.mxu1 %v1143_v38  ;;  %v463_v48 = vld [vmem:[#allocation10 + $0x148] sm:$0xff]  ;;  %v1147_v49 = vpack.c.bf16 %v444_v42, %v440_v41  ;;  %v449_v50 = vld [vmem:[#allocation10 + $0xd8] sm:$0xff]  ;;  %s1889_s11 = sld [smem:[#allocation6 + %s414_s4]] }
  0xa7   : > { %v458_v45 = vld [vmem:[#allocation10 + $0x120] sm:$0xff]  ;;  %v453_v51 = vld [vmem:[#allocation10 + $0xf8] sm:$0xff]  ;;  %v467_v52 = vld [vmem:[#allocation10 + $0x168] sm:$0xff]  ;;  %s391_s22 = scalar_lea.vmem [#allocation7], %s1879_s19 }
  0xa8   : > { %1146 = vmatprep.subr.bf16.mxu1 %v1145_v46  ;;  %v1149_v53 = vpack.c.bf16 %v453_v51, %v449_v50  ;;  %v448_v54 = vld [vmem:[#allocation10 + $0xd0] sm:$0xff]  ;;  %v1091_v56 = vpack.c.bf16 %v458_v45, %v454_v44  ;;  %v457_v57 = vld [vmem:[#allocation10 + $0x118] sm:$0xff]  ;;  %v1093_v59 = vpack.c.bf16 %v467_v52, %v463_v48  ;;  %v462_v60 = vld [vmem:[#allocation10 + $0x140] sm:$0xff]  ;;  %s396_s28 = scalar_lea.vmem [#allocation7], %s1881_s23 }
  0xa9   : > { %1084 = vmatpush1.bf16.msra.mxu0 %v1083_v27  ;;  %v452_v55 = vld [vmem:[#allocation10 + $0xf0] sm:$0xff]  ;;  %v461_v58 = vld [vmem:[#allocation10 + $0x138] sm:$0xff]  ;;  %v466_v61 = vld [vmem:[#allocation10 + $0x160] sm:$0xff]  ;;  %s401_s4 = scalar_lea.vmem [#allocation7], %s1883_s17 }
  0xaa   : > { %1086 = vmatprep.subr.bf16.mxu0 %v1085_v31  ;;  %1148 = vmatpush1.bf16.msra.mxu1 %v1147_v49  ;;  %v471_v62 = vld [vmem:[#allocation10 + $0x188] sm:$0xff]  ;;  %v1151_v63 = vpack.c.bf16 %v452_v55, %v448_v54  ;;  %v1153_v1 = vpack.c.bf16 %v461_v58, %v457_v57  ;;  %v456_v2 = vld [vmem:[#allocation10 + $0x110] sm:$0xff]  ;;  %v465_v4 = vld [vmem:[#allocation10 + $0x158] sm:$0xff]  ;;  %v1095_v6 = vpack.c.bf16 %v466_v61, %v462_v60  ;;  %s406_s29 = scalar_lea.vmem [#allocation7], %s1885_s16 }
  0xab   : > { %v475_v0 = vld [vmem:[#allocation10 + $0x1a8] sm:$0xff]  ;;  %1150 = vmatprep.subr.bf16.mxu1 %v1149_v53  ;;  %v460_v3 = vld [vmem:[#allocation10 + $0x130] sm:$0xff]  ;;  %v469_v5 = vld [vmem:[#allocation10 + $0x178] sm:$0xff]  ;;  %s411_s13 = scalar_lea.vmem [#allocation7], %s1887_s30 }
  0xac   : > { %v1097_v7 = vpack.c.bf16 %v475_v0, %v471_v62  ;;  %v470_v8 = vld [vmem:[#allocation10 + $0x180] sm:$0xff]  ;;  %v479_v10 = vld [vmem:[#allocation10 + $0x1c8] sm:$0xff]  ;;  %v1155_v11 = vpack.c.bf16 %v460_v3, %v456_v2  ;;  %v1157_v13 = vpack.c.bf16 %v469_v5, %v465_v4  ;;  %v464_v14 = vld [vmem:[#allocation10 + $0x150] sm:$0xff]  ;;  %s416_s15 = scalar_lea.vmem [#allocation7], %s1889_s11 }
  0xad   : > { %1088 = vmatpush1.bf16.msra.mxu0 %v1087_v43  ;;  %v474_v9 = vld [vmem:[#allocation10 + $0x1a0] sm:$0xff]  ;;  %v483_v12 = vld [vmem:[#allocation10 + $0x1e8] sm:$0xff]  ;;  %v468_v15 = vld [vmem:[#allocation10 + $0x170] sm:$0xff] }
  0xae   : > { %1090 = vmatprep.subr.bf16.mxu0 %v1089_v47  ;;  %1152 = vmatpush1.bf16.msra.mxu1 %v1151_v63  ;;  %v473_v16 = vld [vmem:[#allocation10 + $0x198] sm:$0xff]  ;;  %v1099_v18 = vpack.c.bf16 %v474_v9, %v470_v8  ;;  %v1101_v19 = vpack.c.bf16 %v483_v12, %v479_v10  ;;  %v478_v20 = vld [vmem:[#allocation10 + $0x1c0] sm:$0xff]  ;;  %v487_v22 = vld [vmem:[#allocation10 + $0x208] sm:$0xff]  ;;  %v1159_v23 = vpack.c.bf16 %v468_v15, %v464_v14 }
  0xaf   : > { %1154 = vmatprep.subr.bf16.mxu1 %v1153_v1  ;;  %v477_v17 = vld [vmem:[#allocation10 + $0x1b8] sm:$0xff]  ;;  %v482_v21 = vld [vmem:[#allocation10 + $0x1e0] sm:$0xff]  ;;  %v491_v24 = vld [vmem:[#allocation10 + $0x228] sm:$0xff] }
  0xb0   : > { %v1161_v25 = vpack.c.bf16 %v477_v17, %v473_v16  ;;  %v472_v26 = vld [vmem:[#allocation10 + $0x190] sm:$0xff]  ;;  %v481_v28 = vld [vmem:[#allocation10 + $0x1d8] sm:$0xff]  ;;  %v1103_v30 = vpack.c.bf16 %v482_v21, %v478_v20  ;;  %v1105_v31 = vpack.c.bf16 %v491_v24, %v487_v22  ;;  %v486_v32 = vld [vmem:[#allocation10 + $0x200] sm:$0xff] }
  0xb1   : > { %1092 = vmatpush1.bf16.msra.mxu0 %v1091_v56  ;;  %v476_v27 = vld [vmem:[#allocation10 + $0x1b0] sm:$0xff]  ;;  %v485_v29 = vld [vmem:[#allocation10 + $0x1f8] sm:$0xff]  ;;  %v490_v33 = vld [vmem:[#allocation10 + $0x220] sm:$0xff] }
  0xb2   : > { %1094 = vmatprep.subr.bf16.mxu0 %v1093_v59  ;;  %1156 = vmatpush1.bf16.msra.mxu1 %v1155_v11  ;;  %v495_v34 = vld [vmem:[#allocation10 + $0x248] sm:$0xff]  ;;  %v1163_v35 = vpack.c.bf16 %v476_v27, %v472_v26  ;;  %v1165_v37 = vpack.c.bf16 %v485_v29, %v481_v28  ;;  %v480_v38 = vld [vmem:[#allocation10 + $0x1d0] sm:$0xff]  ;;  %v489_v40 = vld [vmem:[#allocation10 + $0x218] sm:$0xff]  ;;  %v1107_v42 = vpack.c.bf16 %v490_v33, %v486_v32 }
  0xb3   : > { %1158 = vmatprep.subr.bf16.mxu1 %v1157_v13  ;;  %v499_v36 = vld [vmem:[#allocation10 + $0x268] sm:$0xff]  ;;  %v484_v39 = vld [vmem:[#allocation10 + $0x1f0] sm:$0xff]  ;;  %v493_v41 = vld [vmem:[#allocation10 + $0x238] sm:$0xff] }
  0xb4   : > { %v1109_v43 = vpack.c.bf16 %v499_v36, %v495_v34  ;;  %v494_v44 = vld [vmem:[#allocation10 + $0x240] sm:$0xff]  ;;  %v503_v46 = vld [vmem:[#allocation10 + $0x288] sm:$0xff]  ;;  %v1167_v47 = vpack.c.bf16 %v484_v39, %v480_v38  ;;  %v1169_v49 = vpack.c.bf16 %v493_v41, %v489_v40  ;;  %v488_v50 = vld [vmem:[#allocation10 + $0x210] sm:$0xff] }
  0xb5   : > { %1096 = vmatpush1.bf16.msra.mxu0 %v1095_v6  ;;  %v498_v45 = vld [vmem:[#allocation10 + $0x260] sm:$0xff]  ;;  %v507_v48 = vld [vmem:[#allocation10 + $0x2a8] sm:$0xff]  ;;  %v492_v51 = vld [vmem:[#allocation10 + $0x230] sm:$0xff] }
  0xb6   : > { %1098 = vmatprep.subr.bf16.mxu0 %v1097_v7  ;;  %1160 = vmatpush1.bf16.msra.mxu1 %v1159_v23  ;;  %v497_v52 = vld [vmem:[#allocation10 + $0x258] sm:$0xff]  ;;  %v1111_v54 = vpack.c.bf16 %v498_v45, %v494_v44  ;;  %v502_v55 = vld [vmem:[#allocation10 + $0x280] sm:$0xff]  ;;  %v511_v57 = vld [vmem:[#allocation10 + $0x2c8] sm:$0xff]  ;;  %v1113_v58 = vpack.c.bf16 %v507_v48, %v503_v46  ;;  %v1171_v60 = vpack.c.bf16 %v492_v51, %v488_v50 }
  0xb7   : > { %1162 = vmatprep.subr.bf16.mxu1 %v1161_v25  ;;  %v501_v53 = vld [vmem:[#allocation10 + $0x278] sm:$0xff]  ;;  %v506_v56 = vld [vmem:[#allocation10 + $0x2a0] sm:$0xff]  ;;  %v515_v59 = vld [vmem:[#allocation10 + $0x2e8] sm:$0xff] }
  0xb8   : > { %v496_v61 = vld [vmem:[#allocation10 + $0x250] sm:$0xff]  ;;  %v1173_v63 = vpack.c.bf16 %v501_v53, %v497_v52  ;;  %v505_v0 = vld [vmem:[#allocation10 + $0x298] sm:$0xff]  ;;  %v510_v3 = vld [vmem:[#allocation10 + $0x2c0] sm:$0xff]  ;;  %v1115_v8 = vpack.c.bf16 %v506_v56, %v502_v55  ;;  %v1117_v12 = vpack.c.bf16 %v515_v59, %v511_v57 }
  0xb9   : > { %1100 = vmatpush1.bf16.msra.mxu0 %v1099_v18  ;;  %v500_v62 = vld [vmem:[#allocation10 + $0x270] sm:$0xff]  ;;  %v509_v1 = vld [vmem:[#allocation10 + $0x2b8] sm:$0xff]  ;;  %v514_v4 = vld [vmem:[#allocation10 + $0x2e0] sm:$0xff] }
  0xba   : > { %1102 = vmatprep.subr.bf16.mxu0 %v1101_v19  ;;  %1164 = vmatpush1.bf16.msra.mxu1 %v1163_v35  ;;  %v421_v2 = vld [vmem:[#allocation3] sm:$0xff]  ;;  %v382_v5 = vld [vmem:[%s381_s26] sm:$0x1]  ;;  %v1175_v14 = vpack.c.bf16 %v500_v62, %v496_v61  ;;  %v1177_v18 = vpack.c.bf16 %v509_v1, %v505_v0  ;;  %v513_v21 = vld [vmem:[#allocation10 + $0x2d8] sm:$0xff]  ;;  %v1119_v23 = vpack.c.bf16 %v514_v4, %v510_v3 }
  0xbb   : > { %1166 = vmatprep.subr.bf16.mxu1 %v1165_v37  ;;  %636 = vmatprep.mubr.f32.mxu0 %v421_v2  ;;  %v387_v6 = vld [vmem:[%s386_s14] sm:$0x1]  ;;  %383 = vst [vmem:[#allocation2] sm:$0x1] %v382_v5  ;;  %v504_v19 = vld [vmem:[#allocation10 + $0x290] sm:$0xff]  ;;  %v517_v22 = vld [vmem:[#allocation10 + $0x2f8] sm:$0xff] }
  0xbc   : > { %v392_v7 = vld [vmem:[%s391_s22] sm:$0x1]  ;;  %707 = vmatprep.mubr.f32.mxu1 %v421_v2  ;;  %388 = vst [vmem:[#allocation2 + $0x1] sm:$0x1] %v387_v6  ;;  %v508_v20 = vld [vmem:[#allocation10 + $0x2b0] sm:$0xff]  ;;  %v518_v25 = vld [vmem:[#allocation10 + $0x300] sm:$0xff] }
  0xbd   : > { %1104 = vmatpush1.bf16.msra.mxu0 %v1103_v30  ;;  %393 = vst [vmem:[#allocation2 + $0x2] sm:$0x1] %v392_v7  ;;  %v397_v9 = vld [vmem:[%s396_s28] sm:$0x1]  ;;  %v522_v26 = vld [vmem:[#allocation10 + $0x320] sm:$0xff]  ;;  %v1179_v28 = vpack.c.bf16 %v508_v20, %v504_v19  ;;  %v1181_v30 = vpack.c.bf16 %v517_v22, %v513_v21  ;;  %v516_v32 = vld [vmem:[#allocation10 + $0x2f0] sm:$0xff] }
  0xbe   : > { %1106 = vmatprep.subr.bf16.mxu0 %v1105_v31  ;;  %1168 = vmatpush1.bf16.msra.mxu1 %v1167_v47  ;;  %v402_v10 = vld [vmem:[%s401_s4] sm:$0x1]  ;;  %398 = vst [vmem:[#allocation2 + $0x3] sm:$0x1] %v397_v9  ;;  %v512_v31 = vld [vmem:[#allocation10 + $0x2d0] sm:$0xff]  ;;  %v521_v33 = vld [vmem:[#allocation10 + $0x318] sm:$0xff]  ;;  %v1123_v35 = vpack.c.bf16 %v522_v26, %v518_v25 }
  0xbf   : > { %1170 = vmatprep.subr.bf16.mxu1 %v1169_v49  ;;  %v407_v11 = vld [vmem:[%s406_s29] sm:$0x1]  ;;  %403 = vst [vmem:[#allocation2 + $0x4] sm:$0x1] %v402_v10  ;;  %v525_v34 = vld [vmem:[#allocation10 + $0x338] sm:$0xff]  ;;  %v526_v37 = vld [vmem:[#allocation10 + $0x340] sm:$0xff]  ;;  %v1183_v40 = vpack.c.bf16 %v516_v32, %v512_v31 }
  0xc0   : > { %v519_v13 = vld [vmem:[#allocation10 + $0x308] sm:$0xff]  ;;  %408 = vst [vmem:[#allocation2 + $0x5] sm:$0x1] %v407_v11  ;;  %v530_v38 = vld [vmem:[#allocation10 + $0x360] sm:$0xff]  ;;  %v524_v44 = vld [vmem:[#allocation10 + $0x330] sm:$0xff] }
  0xc1   : > { %1108 = vmatpush1.bf16.msra.mxu0 %v1107_v42  ;;  %v412_v15 = vld [vmem:[%s411_s13] sm:$0x1]  ;;  %v1185_v42 = vpack.c.bf16 %v525_v34, %v521_v33  ;;  %v529_v45 = vld [vmem:[#allocation10 + $0x358] sm:$0xff]  ;;  %v1127_v47 = vpack.c.bf16 %v530_v38, %v526_v37  ;;  %v534_v49 = vld [vmem:[#allocation10 + $0x380] sm:$0xff]  ;;  %v1612_v34 = vmov 0.0  }
  0xc2   : > { %1110 = vmatprep.subr.bf16.mxu0 %v1109_v43  ;;  %1172 = vmatpush1.bf16.msra.mxu1 %v1171_v60  ;;  %v417_v16 = vld [vmem:[%s416_s15] sm:$0x1]  ;;  %413 = vst [vmem:[#allocation2 + $0x6] sm:$0x1] %v412_v15  ;;  %v520_v43 = vld [vmem:[#allocation10 + $0x310] sm:$0xff]  ;;  %v533_v46 = vld [vmem:[#allocation10 + $0x378] sm:$0xff] }
  0xc3   : > { %v523_v17 = vld [vmem:[#allocation10 + $0x328] sm:$0xff]  ;;  %1174 = vmatprep.subr.bf16.mxu1 %v1173_v63  ;;  %418 = vst [vmem:[#allocation2 + $0x7] sm:$0x1] %v417_v16  ;;  %v538_v50 = vld [vmem:[#allocation10 + $0x3a0] sm:$0xff]  ;;  %v1187_v52 = vpack.c.bf16 %v524_v44, %v520_v43  ;;  %v528_v55 = vld [vmem:[#allocation10 + $0x350] sm:$0xff]  ;;  %v1610_v16 = vmov 0.0|0.0  }
  0xc4   : > { %v1121_v24 = vpack.c.bf16 %v523_v17, %v519_v13  ;;  %v527_v27 = vld [vmem:[#allocation10 + $0x348] sm:$0xff]  ;;  %v532_v56 = vld [vmem:[#allocation10 + $0x370] sm:$0xff]  ;;  %v537_v57 = vld [vmem:[#allocation10 + $0x398] sm:$0xff]  ;;  %v1131_v59 = vpack.c.bf16 %v538_v50, %v534_v49 }
  0xc5   : > { %1112 = vmatpush1.bf16.msra.mxu0 %v1111_v54  ;;  %v531_v29 = vld [vmem:[#allocation10 + $0x368] sm:$0xff]  ;;  %v1189_v54 = vpack.c.bf16 %v533_v46, %v529_v45  ;;  %v542_v61 = vld [vmem:[#allocation10 + $0x3c0] sm:$0xff]  ;;  %v1191_v63 = vpack.c.bf16 %v532_v56, %v528_v55  ;;  %v536_v1 = vld [vmem:[#allocation10 + $0x390] sm:$0xff] }
  0xc6   : > { %1114 = vmatprep.subr.bf16.mxu0 %v1113_v58  ;;  %1176 = vmatpush1.bf16.msra.mxu1 %v1175_v14  ;;  %v1125_v36 = vpack.c.bf16 %v531_v29, %v527_v27  ;;  %v535_v39 = vld [vmem:[#allocation10 + $0x388] sm:$0xff]  ;;  %v541_v58 = vld [vmem:[#allocation10 + $0x3b8] sm:$0xff]  ;;  %v546_v62 = vld [vmem:[#allocation10 + $0x3e0] sm:$0xff] }
  0xc7   : > { %1178 = vmatprep.subr.bf16.mxu1 %v1177_v18  ;;  %v539_v41 = vld [vmem:[#allocation10 + $0x3a8] sm:$0xff]  ;;  %v1193_v0 = vpack.c.bf16 %v541_v58, %v537_v57  ;;  %v540_v2 = vld [vmem:[#allocation10 + $0x3b0] sm:$0xff]  ;;  %v545_v3 = vld [vmem:[#allocation10 + $0x3d8] sm:$0xff]  ;;  %v1135_v5 = vpack.c.bf16 %v546_v62, %v542_v61 }
  0xc8   : > { %v1129_v48 = vpack.c.bf16 %v539_v41, %v535_v39  ;;  %v543_v51 = vld [vmem:[#allocation10 + $0x3c8] sm:$0xff]  ;;  %v549_v4 = vld [vmem:[#allocation10 + $0x3f8] sm:$0xff]  ;;  %v1195_v7 = vpack.c.bf16 %v540_v2, %v536_v1  ;;  %v544_v9 = vld [vmem:[#allocation10 + $0x3d0] sm:$0xff]  ;;  %v552_v39 = vlaneseq }
  0xc9   : > { %1116 = vmatpush1.bf16.msra.mxu0 %v1115_v8  ;;  %v547_v53 = vld [vmem:[#allocation10 + $0x3e8] sm:$0xff]  ;;  %v1197_v8 = vpack.c.bf16 %v549_v4, %v545_v3  ;;  %v548_v10 = vld [vmem:[#allocation10 + $0x3f0] sm:$0xff]  ;;  %v744_v18 = vld [vmem:[#allocation13 + $0x18] sm:$0xff] }
  0xca   : > { %1118 = vmatprep.subr.bf16.mxu0 %v1117_v12  ;;  %1180 = vmatpush1.bf16.msra.mxu1 %v1179_v28  ;;  %v1133_v60 = vpack.c.bf16 %v547_v53, %v543_v51  ;;  %v419_v6 = vld [vmem:[#allocation2] sm:$0xff]  ;;  %v1199_v12 = vpack.c.bf16 %v548_v10, %v544_v9  ;;  %v743_v17 = vld [vmem:[#allocation13 + $0x10] sm:$0xff]  ;;  %v756_v37 = vld [vmem:[#allocation13 + $0x78] sm:$0xff] }
  0xcb   : > { %1182 = vmatprep.subr.bf16.mxu1 %v1181_v30  ;;  %v420_v11 = vmax.f32 %v419_v6, 0.0  ;;  %v741_v13 = vld [vmem:[#allocation13] sm:$0xff]  ;;  %v742_v14 = vld [vmem:[#allocation13 + $0x8] sm:$0xff]  ;;  %v1205_v19 = vpack.c.bf16 %v744_v18, %v743_v17  ;;  %v751_v29 = vld [vmem:[#allocation13 + $0x50] sm:$0xff] }
  0xcc   : > { %v1202_v15 = vpack.c.bf16 %v742_v14, %v741_v13  ;;  %v745_v20 = vld [vmem:[#allocation13 + $0x20] sm:$0xff]  ;;  %v746_v21 = vld [vmem:[#allocation13 + $0x28] sm:$0xff]  ;;  %v752_v30 = vld [vmem:[#allocation13 + $0x58] sm:$0xff] }
  0xcd   : > { %1120 = vmatpush1.bf16.msra.mxu0 %v1119_v23  ;;  %v1208_v22 = vpack.c.bf16 %v746_v21, %v745_v20  ;;  %v747_v23 = vld [vmem:[#allocation13 + $0x30] sm:$0xff]  ;;  %v749_v26 = vld [vmem:[#allocation13 + $0x40] sm:$0xff]  ;;  %v750_v27 = vld [vmem:[#allocation13 + $0x48] sm:$0xff]  ;;  %v1217_v31 = vpack.c.bf16 %v752_v30, %v751_v29 }
  0xce   : > { %1122 = vmatprep.subr.bf16.mxu0 %v1121_v24  ;;  %1184 = vmatpush1.bf16.msra.mxu1 %v1183_v40  ;;  %v748_v24 = vld [vmem:[#allocation13 + $0x38] sm:$0xff]  ;;  %v1214_v28 = vpack.c.bf16 %v750_v27, %v749_v26  ;;  %v753_v32 = vld [vmem:[#allocation13 + $0x60] sm:$0xff]  ;;  %v754_v33 = vld [vmem:[#allocation13 + $0x68] sm:$0xff]  ;;  %v553_v40 = vshrl.u32 %v552_v39, 7 }
  0xcf   : > { %1186 = vmatprep.subr.bf16.mxu1 %v1185_v42  ;;  %v1211_v25 = vpack.c.bf16 %v748_v24, %v747_v23  ;;  %v550_v42 = vld [vmem:[#allocation12] sm:$0xf]  ;;  %v733_v3 = vld [vmem:[#allocation4] sm:$0xff]  ;;  %v1011_v13 = vld [vmem:[%s1996_s7] ss:$0 sm:$0xff] }
  0xd0   : > { %v554_v41 = vsub.s32 0, %v553_v40  ;;  %v558_v43 = vsub.s32 1, %v553_v40  ;;  %v566_v46 = vsub.s32 3, %v553_v40 }
  0xd1   : > { %1124 = vmatpush1.bf16.msra.mxu0 %v1123_v35  ;;  %v1220_v35 = vpack.c.bf16 %v754_v33, %v753_v32 }
  0xd2   : > { %1126 = vmatprep.subr.bf16.mxu0 %v1125_v36  ;;  %1188 = vmatpush1.bf16.msra.mxu1 %v1187_v52  ;;  %v755_v36 = vld [vmem:[#allocation13 + $0x70] sm:$0xff]  ;;  %v555_v44 = vrot.slane %v550_v42, %v554_v41  ;;  %v559_v45 = vrot.slane %v550_v42, %v558_v43  ;;  %v567_v52 = vrot.slane %v550_v42, %v566_v46 }
  0xd3   : > { %1190 = vmatprep.subr.bf16.mxu1 %v1189_v54  ;;  %v1223_v38 = vpack.c.bf16 %v756_v37, %v755_v36  ;;  %v562_v54 = vsub.s32 2, %v553_v40 }
  0xd5   : > { %1128 = vmatpush1.bf16.msra.mxu0 %v1127_v47  ;;  %v563_v58 = vrot.slane %v550_v42, %v562_v54 }
  0xd6   : > { %1130 = vmatprep.subr.bf16.mxu0 %v1129_v48  ;;  %1192 = vmatpush1.bf16.msra.mxu1 %v1191_v63 }
  0xd7   : > { %1194 = vmatprep.subr.bf16.mxu1 %v1193_v0 }
  0xd9   : > { %1132 = vmatpush1.bf16.msra.mxu0 %v1131_v59 }
  0xda   : > { %1134 = vmatprep.subr.bf16.mxu0 %v1133_v60  ;;  %1196 = vmatpush1.bf16.msra.mxu1 %v1195_v7 }
  0xdb   : > { %1198 = vmatprep.subr.bf16.mxu1 %v1197_v8 }
  0xdd   : > { %1136 = vmatpush1.bf16.msra.mxu0 %v1135_v5 }
  0xde   : > { %1200 = vmatpush1.bf16.msra.mxu1 %v1199_v12  ;;  %1201 = vmatprep.subr.bf16.mxu0 %v1610_v16 }
  0xe0   : > { %637 = vmatmul.mubr.f32.vlgmr.msra.gmra.mrb[0].mxu0 %v420_v11 }
  0xe1   : > { %708 = vmatmul.mubr.f32.vlgmr.msra.gmra.mrb[0].mxu1 %v420_v11  ;;  %1203 = vmatpush3.bf16.msra.mxu0 %v1202_v15 }
  0xe2   : > { %1204 = vmatprep.subr.bf16.mxu0 %v1610_v16  ;;  %1070 = vmatprep.mubr.msk.f32.mxu0 %vm1611_vm0, %v1612_v34 }
  0xe5   : > { %1206 = vmatpush3.bf16.msra.mxu0 %v1205_v19 }
  0xe6   : > { %1207 = vmatprep.subr.bf16.mxu0 %v1610_v16 }
  0xe9   : > { %1209 = vmatpush3.bf16.msra.mxu0 %v1208_v22 }
  0xea   : > { %1210 = vmatprep.subr.bf16.mxu0 %v1610_v16 }
  0xed   : > { %1212 = vmatpush3.bf16.msra.mxu0 %v1211_v25 }
  0xee   : > { %1213 = vmatprep.subr.bf16.mxu0 %v1610_v16 }
  0xf1   : > { %1215 = vmatpush3.bf16.msra.mxu0 %v1214_v28 }
  0xf2   : > { %1216 = vmatprep.subr.bf16.mxu0 %v1610_v16 }
  0xf5   : > { %1218 = vmatpush3.bf16.msra.mxu0 %v1217_v31 }
  0xf6   : > { %1219 = vmatprep.subr.bf16.mxu0 %v1610_v16 }
  0xf9   : > { %1221 = vmatpush3.bf16.msra.mxu0 %v1220_v35 }
  0xfa   : > { %1222 = vmatprep.subr.bf16.mxu0 %v1610_v16 }
  0xfd   : > { %1224 = vmatpush3.bf16.msra.mxu0 %v1223_v38 }
 0x1b3   : > { %v638_v47 = vpop.f32.mrb[0].mxu0 }
 0x1b4   : > { %v639_v48 = vadd.f32 %v638_v47, %v555_v44  ;;  %v640_v49 = vpop.f32.mrb[1].mxu0  ;;  %v709_v55 = vpop.f32.mrb[0].mxu1 }
 0x1b5   : > { %v641_v50 = vadd.f32 %v640_v49, %v559_v45  ;;  %v711_v56 = vpop.f32.mrb[1].mxu1  ;;  %v710_v60 = vadd.f32 %v709_v55, %v563_v58 }
 0x1b6   : > { %v1008_v51 = vmul.f32 -1.442695, %v639_v48  ;;  %v712_v57 = vadd.f32 %v711_v56, %v567_v52 }
 0x1b7   : > { %v1009_v53 = vmul.f32 -1.442695, %v641_v50 }
 0x1b8   : > { %1327 = vpow2.f32 %v1008_v51  ;;  %v1010_v59 = vmul.f32 -1.442695, %v712_v57 }
 0x1b9   : > { %1329 = vpow2.f32 %v1009_v53 }
 0x1ba   : > { %1331 = vpow2.f32 %v1010_v59 }
 0x1bb   : > { %1333 = vtanh.f32 %v710_v60 }
 0x1c2   : > { %v1328_v61 = vpop.eup %1327 }
 0x1c3   : > { %v1330_v62 = vpop.eup %1329  ;;  %v717_v63 = vadd.f32 1.0, %v1328_v61 }
 0x1c4   : > { %v723_v0 = vadd.f32 1.0, %v1330_v62  ;;  %v1332_v1 = vpop.eup %1331 }
 0x1c5   : > { %1335 = vrcp.f32 %v717_v63  ;;  %v1334_v2 = vpop.eup %1333  ;;  %v730_v5 = vadd.f32 1.0, %v1332_v1 }
 0x1c6   : > { %1337 = vrcp.f32 %v723_v0 }
 0x1c7   : > { %1339 = vrcp.f32 %v730_v5 }
 0x1cf   : > { %v1336_v4 = vpop.eup %1335 }
 0x1d0   : > { %v1338_v6 = vpop.eup %1337  ;;  %v735_v7 = vmul.f32 %v1336_v4, %v1334_v2 }
 0x1d1   : > { %v734_v8 = vmul.f32 %v1338_v6, %v733_v3  ;;  %v1340_v10 = vpop.eup %1339 }
 0x1d3   : > { %v736_v9 = vadd.f32 %v735_v7, %v734_v8 }
 0x1d5   : > { %1341 = vtanh.f32 %v736_v9  ;;  %740 = vst [vmem:[#allocation4] sm:$0xff] %v736_v9  ;;  %840 = vst [vmem:[#allocation18] sm:$0xff] (!%p1012_p5), %v736_v9 }
 0x1df   : > { %v1342_v11 = vpop.eup %1341 }
 0x1e0   : > { %v738_v12 = vmul.f32 %v1342_v11, %v1340_v10 }
 0x1e2   : > { %739 = vst [vmem:[#allocation3] sm:$0xff] %v738_v12  ;;  %1071 = vmatmul.mubr.f32.vlgmr.msra.gmra.mrb[2].mxu0 %v738_v12  ;;  %839 = vst [vmem:[#allocation16] sm:$0xff] (!%p1012_p5), %v738_v12 }
 0x2b2   : > { %838 = sbr.rel (%p1012_p5) target bundleno = 697 (0x2b9), region = 72 }
 0x2b5   : > { %v830_v14 = vpop.f32.mrb[2].mxu0 }
 0x2b6   : > { %v831_v15 = vadd.f32 %v1011_v13, %v830_v14  ;;  %v1072_v16 = vpop.f32.mrb[3].mxu0 }
 0x2b8   : > { %834 = vst [vmem:[%s366_s25] sm:$0xff] %v831_v15 }
 0x2b9 PF: > { %s1613_s23 = smov [#allocation16]   ;;  %s1909_s11 = scalar_lea.hbm %s1997_s8, %s1865_s24 }
 0x2ba   : > { %s866_s17 = sshll.u32 %s1613_s23, 4  ;;  %s855_s26 = sshll.u32 %s366_s25, 4  ;;  %s867_s17 = int_to_ptr.vmem [resolvable:$true] %s866_s17  ;;  %s856_s26 = int_to_ptr.vmem [resolvable:$true] %s855_s26 }
 0x2bb   : > { %s1467_s14 = scalar_lea.vmem %s867_s17, 128  ;;  %p2028_p9 = scmp.eq.s32.totalorder %s1695_s21, 5 }
 0x2bc   : > { %p1468_p8 = scmp.ne.s32.totalorder %s867_s17, %s1467_s14  ;;  %p1474_p3 = scmp.lt.s32.totalorder %s867_s17, %s867_s17 }
 0x2bd   : > { %p1475_p7 = scmp.lt.s32.totalorder %s1467_s14, %s1467_s14 }
 0x2be   : > { %p1469_p12 = pnand %p1468_p8, %p2028_p9 }
 0x2bf   : > { %p1476_p6 = por %p1475_p7, %p1474_p3 }
 0x2c0   : > { %p1470_p13 = pneg %p1469_p12 }
 0x2c2   : > { %p1477_p10 = pnand %p1476_p6, %p1470_p13 }
 0x2c4   : > { %1480 = shalt.err (!%p1477_p10)
}
 0x2c5   : > { %s1481_s4 = scalar_lea.hbm %s1998_s9, 128  ;;  %p2029_p0 = pmov %p2028_p9 }
 0x2c6   : > { %p1482_p11 = scmp.ne.s32.totalorder %s1998_s9, %s1481_s4  ;;  %p1487_p2 = scmp.lt.u32.totalorder %s1481_s4, %s1998_s9 }
 0x2c8   : > { %p1483_p1 = pnand %p1482_p11, %p2029_p0 }
 0x2ca   : > { %p1484_p4 = pneg %p1483_p1 }
 0x2cc   : > { %p1489_p5 = pnand %p1487_p2, %p1484_p4 }
 0x2ce   : > { %1492 = shalt.err (!%p1489_p5)
}
 0x2cf   : > { %p2030_p8 = pmov %p2029_p0  ;;  %s2031_s19 = sand.u32 1, %s1591_s18  }
 0x2d0   : > { %s842_s23 = scalar_lea.sflag [#allocation9], %s2031_s19  ;;  %s1493_s16 = scalar_lea.vmem %s856_s26, 128 }
 0x2d1   : > { %1243 = dma.vmem_to_hbm [thread:$0]  (%p2030_p8), %s867_s17, 128, %s1998_s9, [#allocation17]  }
 0x2d2   : > { %p1494_p9 = scmp.ne.s32.totalorder %s856_s26, %s1493_s16  ;;  %p2032_p12 = scmp.ne.s32.totalorder %s2013_s27, 0 }
 0x2d3   : > { %s1614_s30 = smov [#allocation15]  }
 0x2d4   : > { %p1495_p13 = pnand %p1494_p9, %p2032_p12  ;;  %s1497_s14 = sshll.u32 %s1614_s30, 4  ;;  %s1498_s14 = int_to_ptr.vmem [resolvable:$false] %s1497_s14 }
 0x2d5   : > { %s1499_s22 = scalar_lea.vmem %s1498_s14, 256  ;;  %p1500_p7 = scmp.lt.s32.totalorder %s856_s26, %s1498_s14 }
 0x2d6   : > { %p1496_p3 = pneg %p1495_p13  ;;  %p1501_p6 = scmp.lt.s32.totalorder %s1499_s22, %s1493_s16 }
 0x2d8   : > { %p1502_p10 = por %p1501_p6, %p1500_p7 }
 0x2da   : > { %p1503_p11 = pnand %p1502_p10, %p1496_p3 }
 0x2dc   : > { %1506 = shalt.err (!%p1503_p11)
}
 0x2dd   : > { %s1507_s17 = scalar_lea.hbm %s1909_s11, 128  ;;  %s1511_s24 = scalar_lea.hbm %s1997_s8, 768 }
 0x2de   : > { %p1508_p0 = scmp.ne.s32.totalorder %s1909_s11, %s1507_s17  ;;  %p1512_p2 = scmp.lt.u32.totalorder %s1909_s11, %s1997_s8 }
 0x2df   : > { %p1513_p5 = scmp.lt.u32.totalorder %s1511_s24, %s1507_s17  ;;  %p1515_p9 = scmp.lt.u32.totalorder %s1507_s17, %s1909_s11 }
 0x2e0   : > { %p1509_p1 = pnand %p1508_p0, %p2032_p12 }
 0x2e1   : > { %p1514_p8 = por %p1513_p5, %p1512_p2 }
 0x2e2   : > { %p1510_p4 = pneg %p1509_p1 }
 0x2e3   : > { %p1516_p13 = por %p1515_p9, %p1514_p8 }
 0x2e5   : > { %p1517_p3 = pnand %p1516_p13, %p1510_p4 }
 0x2e7   : > { %1520 = shalt.err (!%p1517_p3)
}
 0x2e8   : > { %1241 = dma.vmem_to_hbm [thread:$0]  (%p2032_p12), %s856_s26, 128, %s1909_s11, %s842_s23  }
 0x2e9   : > { %s1615_s25 = smov [#allocation18]   ;;  %p2033_p6 = scmp.eq.s32.totalorder %s1695_s21, 5 }
 0x2ea   : > { %s877_s15 = sshll.u32 %s1615_s25, 4  ;;  %s878_s15 = int_to_ptr.vmem [resolvable:$true] %s877_s15 }
 0x2eb   : > { %s1521_s29 = scalar_lea.vmem %s878_s15, 128  ;;  %p1528_p0 = scmp.lt.s32.totalorder %s878_s15, %s878_s15 }
 0x2ec   : > { %p1522_p7 = scmp.ne.s32.totalorder %s878_s15, %s1521_s29  ;;  %p1529_p1 = scmp.lt.s32.totalorder %s1521_s29, %s1521_s29 }
 0x2ee   : > { %p1523_p10 = pnand %p1522_p7, %p2033_p6  ;;  %p1530_p2 = por %p1529_p1, %p1528_p0 }
 0x2f0   : > { %p1524_p11 = pneg %p1523_p10 }
 0x2f2   : > { %p1531_p5 = pnand %p1530_p2, %p1524_p11 }
 0x2f4   : > { %1534 = shalt.err (!%p1531_p5)
}
 0x2f5   : > { %s1535_s27 = scalar_lea.hbm %s1999_s10, 128  ;;  %p2034_p4 = pmov %p2033_p6 }
 0x2f6   : > { %p1536_p12 = scmp.ne.s32.totalorder %s1999_s10, %s1535_s27  ;;  %p1541_p13 = scmp.lt.u32.totalorder %s1535_s27, %s1999_s10 }
 0x2f8   : > { %p1537_p8 = pnand %p1536_p12, %p2034_p4 }
 0x2fa   : > { %p1538_p9 = pneg %p1537_p8 }
 0x2fc   : > { %p1543_p3 = pnand %p1541_p13, %p1538_p9 }
 0x2fe   : > { %1546 = shalt.err (!%p1543_p3)
}
 0x2ff   : > { %p2035_p7 = pmov %p2034_p4  ;;  %p2036_p6 = pmov %p2034_p4 }
 0x301   : > { %1245 = dma.vmem_to_hbm [thread:$0]  (%p2035_p7), %s878_s15, 128, %s1999_s10, [#allocation17]  }
 0x302   : > { %1578 = dma.done.wait (%p2036_p6), [#allocation17], 256   ;;  %p2037_p10 = pmov %p2034_p4 }
 0x304   : > { %1580 = vsyncadd (%p2037_p10), [#allocation17], 4294967040 }
 0x305 PF: > { %s2038_s17 = sld [smem:[#allocation28_spill]]  ;;  %p1280_p11 = scmp.ge.s32.totalorder %s1599_s20, 2 }
 0x306   : > { %s897_s28 = sand.u32 1, %s1587_s0  }
 0x307   : > { %s898_s4 = scalar_lea.sflag [#allocation9], %s897_s28 }
 0x30b   : > { %p2039_p0 = scmp.ne.s32.totalorder %s2038_s17, 0 }
 0x30d   : > { %p1265_p1 = pnand %p1280_p11, %p2039_p0 }
 0x30f   : > { %1582 = dma.done.wait (!%p1265_p1), %s898_s4, 128  }
 0x310   : > { %1584 = vsyncadd (!%p1265_p1), %s898_s4, 4294967168  ;;  %s2040_s20 = sld [smem:[#allocation26_spill]]  ;;  %s2041_s24 = sld [smem:[#allocation25_spill]] }
 0x311   : > { %s2042_s19 = sld [smem:[#allocation27_spill]]  ;;  %s2043_s0 = smov %s1591_s18 }
 0x316   : > { %p31_p2 = scmp.ge.s32.totalorder %s2040_s20, 8   ;;  %s2044_s18 = smov %s2041_s24 }
 0x318   :  { %33 = sbr.rel (!%p31_p2) target bundleno = 22 (0x16), region = 129 }
 0x31f   :  { %903 = vsyncpa [#allocation8], 1 }
 0x320   :  { %905 = vsyncpa [#allocation8 + $0x1], 1 }
 0x321   :  { %906 = vsyncpa [#allocation11], 1 }
 0x322   :  { %907 = vsyncpa [#allocation14], 1 }
 0x323   :  { %908 = vsyncpa [#allocation9], 1 }
 0x324   :  { %910 = vsyncpa [#allocation9 + $0x1], 1 }
 0x325   :  { %911 = vsyncpa [#allocation17], 1 }

</bundles_post_ra>
